<compile_context>
chip_gen: v7x
topology: tpu7x:2x2x1
jax: 0.10.0
libtpu: 0.0.40
codegen_flags: <defaults>
</compile_context>

<pallas_src>
import jax
import jax.numpy as jnp
import numpy as np
from jax.experimental import pallas as pl
from jax.experimental.pallas import tpu as pltpu


def attention_kernel(hidden_ref, enc_ref, w_h_ref, w_e_ref, b_fc_ref, v_ref, out_ref):
    # hidden_ref : (TB, Ddec)      decoder hidden states for this batch tile
    # enc_ref    : (TB, S, Denc)   encoder outputs for this batch tile
    # w_h_ref    : (Ddec, Ddec)    fc weight slab acting on the hidden part of the concat
    # w_e_ref    : (Denc, Ddec)    fc weight slab acting on the encoder part of the concat
    # b_fc_ref   : (1, Ddec)       fc bias
    # v_ref      : (1, Ddec)       v weight as a lane-dense row (no bias)
    # out_ref    : (TB, S)         softmax attention scores (lane-dense rows)
    tb, s, denc = enc_ref.shape
    ddec = hidden_ref.shape[1]

    h = hidden_ref[...]                                    # (TB, Ddec)
    enc2d = enc_ref[...].reshape(tb * s, denc)             # fold batch into matmul M

    # Split-fc: hidden contribution (one small matmul per tile) + bias, computed once.
    hw = jnp.dot(h, w_h_ref[...], preferred_element_type=jnp.float32) + b_fc_ref[...]

    # Encoder contribution: single (TB*S, Denc) @ (Denc, Ddec) MXU matmul.
    ew = jnp.dot(enc2d, w_e_ref[...], preferred_element_type=jnp.float32)

    # EUP-bound step at real sizes: Ddec tanh's per (b, s) element.
    energy = jnp.tanh(ew.reshape(tb, s, ddec) + hw[:, None, :])        # (TB, S, Ddec)

    # v projection as VPU multiply + lane (XLU) reduction — keeps the MXU out of it.
    v_row = v_ref[...].reshape(1, 1, ddec)
    logits = jnp.sum(energy * v_row, axis=-1)              # (TB, S)

    # Softmax over the sequence dimension, per batch row (f32, exact divide for tolerance).
    m = jnp.max(logits, axis=-1, keepdims=True)
    e = jnp.exp(logits - m)
    inv = 1.0 / jnp.sum(e, axis=-1, keepdims=True)
    out_ref[...] = (e * inv).astype(out_ref.dtype)
    # TODO(synk): gated fast paths for production sizes: pl.reciprocal(approx=True) for the
    # softmax denom and bf16 (enc, W_e) MXU inputs with f32 accumulation — both break the
    # 1e-5 test tolerance as written, so they stay behind a flag.


def _pick_batch_tile(B, S):
    """Small problems: one grid step (tb=B). Large: split only when each step keeps >=256
    matmul rows and tb is 8-aligned (or == B), so blocks stay (8,128)-friendly."""
    if B * S <= 512:
        return B
    divisors = [d for d in range(1, B + 1) if B % d == 0]
    good = [d for d in divisors if (d % 8 == 0 or d == B) and d * S >= 256]
    if good:
        return min(good)
    return B


def attention_forward(hidden, encoder_outputs, w_h, w_e, b_fc, v_row, *, tb=None):
    B, S, Denc = encoder_outputs.shape
    Ddec = hidden.shape[1]
    if tb is None:
        tb = _pick_batch_tile(B, S)

    itemsize = 4  # f32
    cost = pl.CostEstimate(
        flops=2 * B * S * Denc * Ddec            # encoder matmul
        + 2 * B * Ddec * Ddec                    # hidden matmul
        + 3 * B * S * Ddec                       # broadcast add + v mul/reduce
        + 4 * B * S,                             # softmax arithmetic
        transcendentals=B * S * Ddec + B * S,    # tanh + exp
        bytes_accessed=itemsize * (B * S * Denc + B * Ddec
                                   + Ddec * Ddec + Denc * Ddec + 2 * Ddec
                                   + B * S),
    )

    return pl.pallas_call(
        attention_kernel,
        out_shape=jax.ShapeDtypeStruct((B, S), jnp.float32),
        grid=(B // tb,),
        in_specs=[
            pl.BlockSpec((tb, Ddec), lambda b: (b, 0)),
            pl.BlockSpec((tb, S, Denc), lambda b: (b, 0, 0)),
            pl.BlockSpec((Ddec, Ddec), lambda b: (0, 0)),   # constant block -> stays resident
            pl.BlockSpec((Denc, Ddec), lambda b: (0, 0)),
            pl.BlockSpec((1, Ddec), lambda b: (0, 0)),
            pl.BlockSpec((1, Ddec), lambda b: (0, 0)),
        ],
        out_specs=pl.BlockSpec((tb, S), lambda b: (b, 0)),
        compiler_params=pltpu.CompilerParams(dimension_semantics=("parallel",)),
        cost_estimate=cost,
    )(hidden, encoder_outputs, w_h, w_e, b_fc, v_row)
    # TODO(synk): for production (large S / Denc) sizes, add an S-tiling grid axis with an
    # online (running max/sum) softmax, keep the (tb, S_tile, Ddec) energy tile small (or
    # fuse the v-reduction per chunk in a lax.fori_loop(unroll=True)) to avoid vreg spills,
    # and set vmem_limit_bytes explicitly (v7x has only 64 MiB VMEM vs 128 MiB on v5e/v6e).


def attention_ref(hidden, encoder_outputs, w_h, w_e, b_fc, v_row):
    """Plain-JAX reference mirroring the PyTorch forward exactly (cat + Linear + v + softmax)."""
    S = encoder_outputs.shape[1]
    w_fc_t = jnp.concatenate([w_h, w_e], axis=0)           # concat order: (hidden, enc)
    h_rep = jnp.repeat(hidden[:, None, :], S, axis=1)
    cat = jnp.concatenate([h_rep, encoder_outputs], axis=2)
    energy = jnp.tanh(cat @ w_fc_t + b_fc)
    attn = (energy @ v_row.T)[..., 0]                      # (B, S)
    return jax.nn.softmax(attn, axis=-1)


if __name__ == "__main__":
    B, S = 2, 8
    ENC_HIDDEN, DEC_HIDDEN = 32, 32

    key = jax.random.PRNGKey(0)
    k_h, k_e, k_wh, k_we, k_b, k_v = jax.random.split(key, 6)

    hidden = jax.random.normal(k_h, (B, DEC_HIDDEN), dtype=jnp.float32)
    encoder_outputs = jax.random.normal(k_e, (B, S, ENC_HIDDEN), dtype=jnp.float32)

    # Parameters (deterministic, synthetic): fc weight stored pre-split & pre-transposed
    # as W_h (Ddec, Ddec) and W_e (Denc, Ddec); fc bias (1, Ddec); v weight as a (1, Ddec) row.
    w_h = jax.random.normal(k_wh, (DEC_HIDDEN, DEC_HIDDEN), dtype=jnp.float32) * 0.1
    w_e = jax.random.normal(k_we, (ENC_HIDDEN, DEC_HIDDEN), dtype=jnp.float32) * 0.1
    b_fc = jax.random.normal(k_b, (1, DEC_HIDDEN), dtype=jnp.float32) * 0.1
    v_row = jax.random.normal(k_v, (1, DEC_HIDDEN), dtype=jnp.float32) * 0.1

    scores = attention_forward(hidden, encoder_outputs, w_h, w_e, b_fc, v_row)
    scores = jax.block_until_ready(scores)

    ref = attention_ref(hidden, encoder_outputs, w_h, w_e, b_fc, v_row)
    np.testing.assert_allclose(np.asarray(scores), np.asarray(ref), rtol=1e-5, atol=1e-5)
    assert scores.shape == (B, S)

    print("KERNEL_OK")
</pallas_src>

<mosaic_0001>
module attributes {stable_mosaic.version = 11 : i64} {
  func.func @attention_kernel(%arg0: i32, %arg1: memref<2x32xf32, #tpu.memory_space<vmem>>, %arg2: memref<2x8x32xf32, #tpu.memory_space<vmem>>, %arg3: memref<32x32xf32, #tpu.memory_space<vmem>>, %arg4: memref<32x32xf32, #tpu.memory_space<vmem>>, %arg5: memref<1x32xf32, #tpu.memory_space<vmem>>, %arg6: memref<1x32xf32, #tpu.memory_space<vmem>>, %arg7: memref<2x8xf32, #tpu.memory_space<vmem>>) attributes {dimension_semantics = [#tpu.dimension_semantics<parallel>], iteration_bounds = array<i64: 1>, scalar_prefetch = 0 : i64, scratch_operands = 0 : i64, tpu.core_type = #tpu.core_type<tc>, window_params = [{transform_indices = @transform_0, window_bounds = array<i64: 2, 32>}, {transform_indices = @transform_1, window_bounds = array<i64: 2, 8, 32>}, {pipeline_mode = #tpu.pipeline_mode<synchronous>, transform_indices = @transform_2, window_bounds = array<i64: 32, 32>}, {pipeline_mode = #tpu.pipeline_mode<synchronous>, transform_indices = @transform_3, window_bounds = array<i64: 32, 32>}, {pipeline_mode = #tpu.pipeline_mode<synchronous>, transform_indices = @transform_4, window_bounds = array<i64: 1, 32>}, {pipeline_mode = #tpu.pipeline_mode<synchronous>, transform_indices = @transform_5, window_bounds = array<i64: 1, 32>}, {transform_indices = @transform_6, window_bounds = array<i64: 2, 8>}]} {
    %c0 = arith.constant 0 : index
    %c0_0 = arith.constant 0 : index
    %0 = vector.load %arg1[%c0, %c0_0] : memref<2x32xf32, #tpu.memory_space<vmem>>, vector<2x32xf32>
    %c0_1 = arith.constant 0 : index
    %c0_2 = arith.constant 0 : index
    %c0_3 = arith.constant 0 : index
    %1 = vector.load %arg2[%c0_1, %c0_2, %c0_3] : memref<2x8x32xf32, #tpu.memory_space<vmem>>, vector<2x8x32xf32>
    %2 = vector.shape_cast %1 : vector<2x8x32xf32> to vector<16x32xf32>
    %c0_4 = arith.constant 0 : index
    %c0_5 = arith.constant 0 : index
    %3 = vector.load %arg3[%c0_4, %c0_5] : memref<32x32xf32, #tpu.memory_space<vmem>>, vector<32x32xf32>
    %cst = arith.constant dense<0.000000e+00> : vector<2x32xf32>
    %4 = tpu.matmul %0, %3, %cst {dimension_numbers = #tpu.dot_dimension_numbers<[1], [0], [0], [1], [0, 0, 1, 1], [], []>} : vector<2x32xf32>, vector<32x32xf32>, vector<2x32xf32> -> vector<2x32xf32>
    %c0_6 = arith.constant 0 : index
    %c0_7 = arith.constant 0 : index
    %5 = vector.load %arg5[%c0_6, %c0_7] : memref<1x32xf32, #tpu.memory_space<vmem>>, vector<1x32xf32>
    %6 = vector.broadcast %5 : vector<1x32xf32> to vector<2x32xf32>
    %7 = arith.addf %4, %6 : vector<2x32xf32>
    %c0_8 = arith.constant 0 : index
    %c0_9 = arith.constant 0 : index
    %8 = vector.load %arg4[%c0_8, %c0_9] : memref<32x32xf32, #tpu.memory_space<vmem>>, vector<32x32xf32>
    %cst_10 = arith.constant dense<0.000000e+00> : vector<16x32xf32>
    %9 = tpu.matmul %2, %8, %cst_10 {dimension_numbers = #tpu.dot_dimension_numbers<[1], [0], [0], [1], [0, 0, 1, 1], [], []>} : vector<16x32xf32>, vector<32x32xf32>, vector<16x32xf32> -> vector<16x32xf32>
    %10 = vector.shape_cast %9 : vector<16x32xf32> to vector<2x8x32xf32>
    %11 = vector.shape_cast %7 : vector<2x32xf32> to vector<2x1x32xf32>
    %12 = vector.broadcast %11 : vector<2x1x32xf32> to vector<2x8x32xf32>
    %13 = arith.addf %10, %12 : vector<2x8x32xf32>
    %14 = math.tanh %13 : vector<2x8x32xf32>
    %c0_11 = arith.constant 0 : index
    %c0_12 = arith.constant 0 : index
    %15 = vector.load %arg6[%c0_11, %c0_12] : memref<1x32xf32, #tpu.memory_space<vmem>>, vector<1x32xf32>
    %16 = vector.shape_cast %15 : vector<1x32xf32> to vector<1x1x32xf32>
    %17 = vector.broadcast %16 : vector<1x1x32xf32> to vector<2x8x32xf32>
    %18 = arith.mulf %14, %17 : vector<2x8x32xf32>
    %cst_13 = arith.constant dense<0.000000e+00> : vector<2x8xf32>
    %19 = vector.multi_reduction <add>, %18, %cst_13 [2] : vector<2x8x32xf32> to vector<2x8xf32>
    %cst_14 = arith.constant dense<0xFF800000> : vector<2xf32>
    %20 = vector.multi_reduction <maximumf>, %19, %cst_14 [1] : vector<2x8xf32> to vector<2xf32>
    %21 = vector.shape_cast %20 : vector<2xf32> to vector<2x1xf32>
    %22 = vector.broadcast %21 : vector<2x1xf32> to vector<2x8xf32>
    %23 = arith.subf %19, %22 : vector<2x8xf32>
    %24 = math.exp %23 : vector<2x8xf32>
    %cst_15 = arith.constant dense<0.000000e+00> : vector<2xf32>
    %25 = vector.multi_reduction <add>, %24, %cst_15 [1] : vector<2x8xf32> to vector<2xf32>
    %26 = vector.shape_cast %25 : vector<2xf32> to vector<2x1xf32>
    %cst_16 = arith.constant 1.000000e+00 : f32
    %27 = vector.broadcast %cst_16 : f32 to vector<2x1xf32>
    %28 = arith.divf %27, %26 : vector<2x1xf32>
    %29 = vector.broadcast %28 : vector<2x1xf32> to vector<2x8xf32>
    %30 = arith.mulf %24, %29 : vector<2x8xf32>
    %c0_17 = arith.constant 0 : index
    %c0_18 = arith.constant 0 : index
    %31 = vector.load %arg7[%c0_17, %c0_18] : memref<2x8xf32, #tpu.memory_space<vmem>>, vector<2x8xf32>
    tpu.vector_store %arg7[%c0_17, %c0_18], %30 {strides = array<i32>} : memref<2x8xf32, #tpu.memory_space<vmem>>, vector<2x8xf32>,
    return
  }
  func.func @transform_0(%arg0: i32) -> (i32, i32) {
    %c0_i32 = arith.constant 0 : i32
    %c0_i32_0 = arith.constant 0 : i32
    return %arg0, %c0_i32 : i32, i32
  }
  func.func @transform_1(%arg0: i32) -> (i32, i32, i32) {
    %c0_i32 = arith.constant 0 : i32
    %c0_i32_0 = arith.constant 0 : i32
    %c0_i32_1 = arith.constant 0 : i32
    return %arg0, %c0_i32, %c0_i32_0 : i32, i32, i32
  }
  func.func @transform_2(%arg0: i32) -> (i32, i32) {
    %c0_i32 = arith.constant 0 : i32
    %c0_i32_0 = arith.constant 0 : i32
    %c0_i32_1 = arith.constant 0 : i32
    return %c0_i32, %c0_i32_0 : i32, i32
  }
  func.func @transform_3(%arg0: i32) -> (i32, i32) {
    %c0_i32 = arith.constant 0 : i32
    %c0_i32_0 = arith.constant 0 : i32
    %c0_i32_1 = arith.constant 0 : i32
    return %c0_i32, %c0_i32_0 : i32, i32
  }
  func.func @transform_4(%arg0: i32) -> (i32, i32) {
    %c0_i32 = arith.constant 0 : i32
    %c0_i32_0 = arith.constant 0 : i32
    %c0_i32_1 = arith.constant 0 : i32
    return %c0_i32, %c0_i32_0 : i32, i32
  }
  func.func @transform_5(%arg0: i32) -> (i32, i32) {
    %c0_i32 = arith.constant 0 : i32
    %c0_i32_0 = arith.constant 0 : i32
    %c0_i32_1 = arith.constant 0 : i32
    return %c0_i32, %c0_i32_0 : i32, i32
  }
  func.func @transform_6(%arg0: i32) -> (i32, i32) {
    %c0_i32 = arith.constant 0 : i32
    %c0_i32_0 = arith.constant 0 : i32
    return %arg0, %c0_i32 : i32, i32
  }
}

</mosaic_0001>

<bundles_post_ra>
// kernel: tpu_custom_call.1
= control target key start
LH: loop header
LB: loop body
LE: loop exit
PB: predicated region body
PF: predicated region fallthrough
CT: control target
= control target key end

     0   :  { %11 = vsyncpa [#allocation3], 0  ;;  %s743_s0 = inlined_call_operand.hbm [shape: f32[2,32], index: 0, kind: input, shape index: {}]   ;;  %s744_s1 = inlined_call_operand.hbm [shape: f32[2,8,32], index: 1, kind: input, shape index: {}]   ;;  %s745_s2 = inlined_call_operand.hbm [shape: f32[32,32], index: 2, kind: input, shape index: {}]   ;;  %s746_s3 = inlined_call_operand.hbm [shape: f32[32,32], index: 3, kind: input, shape index: {}]   ;;  %s747_s4 = inlined_call_operand.vmem [shape: f32[1,32], index: 4, kind: input, shape index: {}]   ;;  %s748_s5 = inlined_call_operand.vmem [shape: f32[1,32], index: 5, kind: input, shape index: {}]   ;;  %s749_s6 = inlined_call_operand.hbm [shape: f32[2,8], index: 6, kind: output, shape index: {}]  }
   0x1   :  { %12 = vsyncpa [#allocation6], 0 }
   0x2   :  { %13 = vsyncpa [#allocation9], 0 }
   0x3   :  { %14 = vsyncpa [#allocation4], 0  ;;  %s604_s21 = smov [#allocation5]   ;;  %s486_s25 = scalar_lea.hbm %s744_s1, 256 }
   0x4   :  { %s30_s22 = sshll.u32 %s604_s21, 4  ;;  %p487_p0 = scmp.ne.s32.totalorder %s744_s1, %s486_s25  ;;  %s31_s22 = int_to_ptr.vmem [resolvable:$true] %s30_s22 }
   0x5   :  { %p490_p1 = scmp.lt.u32.totalorder %s486_s25, %s744_s1 }
   0x7   :  { %p492_p2 = pnand %p490_p1, %p487_p0 }
   0x9   :  { %495 = shalt.err (!%p492_p2)
}
   0xa   :  { %s496_s30 = scalar_lea.vmem %s31_s22, 256  ;;  %p501_p4 = scmp.lt.s32.totalorder %s31_s22, %s31_s22 }
   0xb   :  { %p497_p3 = scmp.ne.s32.totalorder %s31_s22, %s496_s30  ;;  %p502_p5 = scmp.lt.s32.totalorder %s496_s30, %s496_s30 }
   0xd   :  { %p503_p6 = por %p502_p5, %p501_p4 }
   0xf   :  { %p504_p7 = pnand %p503_p6, %p497_p3 }
  0x11   :  { %507 = shalt.err (!%p504_p7)
}
  0x12   :  { %s605_s7 = smov 128   ;;  %s606_s8 = smov 8  }
  0x13   :  { %36 = dma.hbm_to_vmem [thread:$0]  %s744_s1, 256, %s31_s22, [#allocation6], %s605_s7, %s605_s7, %s606_s8  }
  0x14   :  { %s607_s11 = smov [#allocation2]   ;;  %s608_s13 = smov [#allocation7]  }
  0x15   :  { %s21_s12 = sshll.u32 %s607_s11, 4  ;;  %s42_s14 = sshll.u32 %s608_s13, 4  ;;  %s22_s12 = int_to_ptr.vmem [resolvable:$true] %s21_s12  ;;  %s43_s14 = int_to_ptr.vmem [resolvable:$true] %s42_s14 }
  0x16   :  { %s508_s17 = scalar_lea.hbm %s743_s0, 32 }
  0x17   :  { %p509_p8 = scmp.ne.s32.totalorder %s743_s0, %s508_s17  ;;  %p512_p9 = scmp.lt.u32.totalorder %s508_s17, %s743_s0 }
  0x19   :  { %p514_p10 = pnand %p512_p9, %p509_p8 }
  0x1b   :  { %517 = shalt.err (!%p514_p10)
}
  0x1c   :  { %s518_s1 = scalar_lea.vmem %s22_s12, 32  ;;  %p523_p12 = scmp.lt.s32.totalorder %s22_s12, %s22_s12 }
  0x1d   :  { %p519_p11 = scmp.ne.s32.totalorder %s22_s12, %s518_s1  ;;  %p524_p13 = scmp.lt.s32.totalorder %s518_s1, %s518_s1 }
  0x1f   :  { %p525_p0 = por %p524_p13, %p523_p12 }
  0x21   :  { %p526_p1 = pnand %p525_p0, %p519_p11 }
  0x23   :  { %529 = shalt.err (!%p526_p1)
}
  0x24   :  { %24 = dma.hbm_to_vmem [thread:$0]  %s743_s0, 32, %s22_s12, [#allocation3]  }
  0x25   :  { %s530_s26 = scalar_lea.hbm %s745_s2, 512 }
  0x26   :  { %p531_p2 = scmp.ne.s32.totalorder %s745_s2, %s530_s26  ;;  %p534_p3 = scmp.lt.u32.totalorder %s530_s26, %s745_s2 }
  0x28   :  { %p536_p4 = pnand %p534_p3, %p531_p2 }
  0x2a   :  { %539 = shalt.err (!%p536_p4)
}
  0x2b   :  { %s540_s9 = scalar_lea.vmem %s43_s14, 512  ;;  %p545_p6 = scmp.lt.s32.totalorder %s43_s14, %s43_s14 }
  0x2c   :  { %p541_p5 = scmp.ne.s32.totalorder %s43_s14, %s540_s9  ;;  %p546_p7 = scmp.lt.s32.totalorder %s540_s9, %s540_s9 }
  0x2e   :  { %p547_p8 = por %p546_p7, %p545_p6 }
  0x30   :  { %p548_p9 = pnand %p547_p8, %p541_p5 }
  0x32   :  { %551 = shalt.err (!%p548_p9)
}
  0x33   :  { %48 = dma.hbm_to_vmem [thread:$0]  %s745_s2, 512, %s43_s14, [#allocation6], %s605_s7, %s605_s7, %s606_s8  }
  0x34   :  { %s609_s11 = smov [#allocation8]   ;;  %s552_s16 = scalar_lea.hbm %s746_s3, 512 }
  0x35   :  { %s54_s12 = sshll.u32 %s609_s11, 4  ;;  %p553_p10 = scmp.ne.s32.totalorder %s746_s3, %s552_s16  ;;  %s55_s12 = int_to_ptr.vmem [resolvable:$true] %s54_s12 }
  0x36   :  { %p556_p11 = scmp.lt.u32.totalorder %s552_s16, %s746_s3 }
  0x38   :  { %p558_p12 = pnand %p556_p11, %p553_p10 }
  0x3a   :  { %561 = shalt.err (!%p558_p12)
}
  0x3b   :  { %s562_s21 = scalar_lea.vmem %s55_s12, 512  ;;  %p567_p0 = scmp.lt.s32.totalorder %s55_s12, %s55_s12 }
  0x3c   :  { %p563_p13 = scmp.ne.s32.totalorder %s55_s12, %s562_s21  ;;  %p568_p1 = scmp.lt.s32.totalorder %s562_s21, %s562_s21 }
  0x3e   :  { %p569_p2 = por %p568_p1, %p567_p0 }
  0x40   :  { %p570_p3 = pnand %p569_p2, %p563_p13 }
  0x42   :  { %573 = shalt.err (!%p570_p3)
}
  0x43   :  { %60 = dma.hbm_to_vmem [thread:$0]  %s746_s3, 512, %s55_s12, [#allocation9], %s605_s7, %s605_s7, %s606_s8  }
  0x44   :  { %596 = dma.done.wait [#allocation3], 32  }
  0x45   :  { %597 = vsyncadd [#allocation3], 4294967264 }
  0x46   :  { %598 = dma.done.wait [#allocation6], 768  }
  0x47   :  { %599 = vsyncadd [#allocation6], 4294966528 }
  0x48   :  { %600 = dma.done.wait [#allocation9], 512  }
  0x49   :  { %601 = vsyncadd [#allocation9], 4294966784  ;;  %v610_v0 = vmov 0.0|0.0   ;;  %vm611_vm0 = vmmov 0   ;;  %v612_v1 = vmov 0.0   ;;  %v80_v2 = vld [vmem:[#allocation7] sm:$0xff]  ;;  %v254_v19 = vlaneseq }
  0x4a   :  { %448 = vmatprep.subr.bf16.mxu0 %v610_v0  ;;  %434 = vmatprep.mubr.msk.f32.mxu0 %vm611_vm0, %v612_v1  ;;  %v81_v3 = vld [vmem:[#allocation7 + $0x8] sm:$0xff]  ;;  %v82_v4 = vld [vmem:[#allocation7 + $0x10] sm:$0xff]  ;;  %v83_v6 = vld [vmem:[#allocation7 + $0x18] sm:$0xff]  ;;  %vm91_vm1 = vcmask 261120   ;;  %v613_v17 = vmov 1966171168  }
  0x4b   :  { %v449_v5 = vpack.c.bf16 %v81_v3, %v80_v2  ;;  %v165_v7 = vld [vmem:[#allocation8] sm:$0xff]  ;;  %v166_v8 = vld [vmem:[#allocation8 + $0x8] sm:$0xff]  ;;  %v167_v10 = vld [vmem:[#allocation8 + $0x10] sm:$0xff]  ;;  %v452_v12 = vpack.c.bf16 %v83_v6, %v82_v4  ;;  %v252_v18 = vunpack.c.l.s4 %v613_v17  ;;  %v711_v21 = vshrl.u32 %v254_v19, 7 }
  0x4c   :  { %v454_v9 = vpack.c.bf16 %v166_v8, %v165_v7  ;;  %v168_v11 = vld [vmem:[#allocation8 + $0x18] sm:$0xff]  ;;  %v78_v14 = vld [vmem:[#allocation5] sm:$0xff]  ;;  %v77_v15 = vld [vmem:[#allocation2] sm:$0x3]  ;;  %v305_v45 = vand.u32 127, %v254_v19  ;;  %vm314_vm2 = vcmask 1041409  }
  0x4d   :  { %450 = vmatpush3.bf16.msra.mxu0 %v449_v5  ;;  %v458_v13 = vpack.c.bf16 %v168_v11, %v167_v10  ;;  %445 = vmatprep.mubr.msk.f32.mxu1 %vm91_vm1, %v78_v14  ;;  %v79_v16 = vld [vmem:[#allocation5 + $0x8] sm:$0xff]  ;;  %v253_v20 = vunpack.c.0.s8 %v252_v18  ;;  %v410_v22 = vld [vmem:[%s747_s4] ss:$0 sm:$0xff]  ;;  %v275_v29 = vsub.s32 0, %v711_v21  ;;  %vm317_vm3 = vcmask 58368  }
  0x4e   :  { %451 = vmatprep.subr.bf16.mxu0 %v610_v0  ;;  %455 = vmatprep.subr.bf16.mxu1 %v454_v9  ;;  %v414_v38 = vld [vmem:[%s748_s5] ss:$0 sm:$0xff]  ;;  %v308_v47 = vsub.s32 %v305_v45, %v711_v21  ;;  %v614_v53 = vmov 0   ;;  %v328_v54 = vsub.s32 1, %v711_v21  ;;  %s615_s5 = smov [#allocation10]  }
  0x4f   :  { %457 = vmatpush3.bf16.msra.mxu1 %v454_v9  ;;  %v256_v23 = vsub.s32 %v253_v20, %v711_v21  ;;  %475 = vset.pattern.permute.xlu0 %v614_v53  ;;  %s399_s1 = sshll.u32 %s615_s5, 4  ;;  %s400_s1 = int_to_ptr.vmem [resolvable:$true] %s399_s1 }
  0x50   :  { %459 = vmatprep.subr.bf16.mxu1 %v458_v13  ;;  %474 = vset.pattern.permute.xlu1 %v614_v53  ;;  %s574_s22 = scalar_lea.vmem %s400_s1, 32  ;;  %p579_p5 = scmp.lt.s32.totalorder %s400_s1, %s400_s1 }
  0x51   :  { %453 = vmatpush3.bf16.msra.mxu0 %v452_v12  ;;  %p575_p4 = scmp.ne.s32.totalorder %s400_s1, %s574_s22  ;;  %p580_p6 = scmp.lt.s32.totalorder %s574_s22, %s574_s22 }
  0x53   :  { %461 = vmatpush3.bf16.msra.mxu1 %v458_v13  ;;  %p581_p7 = por %p580_p6, %p579_p5 }
  0x54   :  { %435 = vmatmul.mubr.msk.f32.vlgmr.msra.gmra.mrb[0].mxu0 %vm91_vm1, %v77_v15 }
  0x55   :  { %p582_p8 = pnand %p581_p7, %p575_p4 }
  0x56   :  { %446 = vmatmul.mubr.msk.f32.vlgmr.msra.gmra.mrb[0].mxu1 %vm91_vm1, %v79_v16 }
 0x127   :  { %v161_v24 = vpop.f32.mrb[0].mxu0 }
 0x128   :  { %v162_v25 = vadd.f32 %v410_v22, %v161_v24  ;;  %v436_v26 = vpop.f32.mrb[1].mxu0 }
 0x129   :  { %v447_v27 = vpop.f32.mrb[0].mxu1 }
 0x12a   :  { %v257_v28 = vrot.slane %v162_v25, %v256_v23  ;;  %v241_v30 = vpop.f32.mrb[1].mxu1 }
 0x12c   :  { %v258_v31 = vcombine.high %v257_v28, %v257_v28  ;;  %v265_v32 = vrot.slane %v257_v28, %v256_v23 }
 0x12e   :  { %v272_v33 = vrot.slane %v258_v31, %v256_v23  ;;  %v276_v34 = vrot.slane %v265_v32, %v275_v29 }
 0x130   :  { %v280_v35 = vrot.slane %v272_v33, %v275_v29  ;;  %v283_v36 = vadd.f32 %v276_v34, %v241_v30 }
 0x132   :  { %v284_v37 = vadd.f32 %v447_v27, %v280_v35  ;;  %476 = vtanh.f32 %v283_v36 }
 0x134   :  { %478 = vtanh.f32 %v284_v37 }
 0x13c   :  { %v477_v39 = vpop.eup %476 }
 0x13d   :  { %v294_v40 = vmul.f32 %v477_v39, %v414_v38 }
 0x13e   :  { %v479_v41 = vpop.eup %478 }
 0x13f   :  { %v296_v42 = vsel %vm91_vm1, %v294_v40, 0.0  ;;  %v295_v43 = vmul.f32 %v479_v41, %v414_v38 }
 0x140   :  { %297 = vadd.xlane.f32.xlu0 %v296_v42 }
 0x141   :  { %v299_v44 = vsel %vm91_vm1, %v295_v43, 0.0 }
 0x144   :  { %300 = vadd.xlane.f32.xlu0 %v299_v44 }
 0x1cd   :  { %v298_v46 = vpop.xlane.xlu0 %297 }
 0x1ce   :  { %v309_v49 = vrot.slane %v298_v46, %v308_v47 }
 0x1d1   :  { %v301_v48 = vpop.xlane.xlu0 %300 }
 0x1d2   :  { %v313_v50 = vrot.slane %v301_v48, %v308_v47 }
 0x1d4   :  { %v315_v51 = vsel %vm314_vm2, %v313_v50, %v309_v49 }
 0x1d5   :  { %v318_v52 = vsel %vm317_vm3, %v315_v51, -inf }
 0x1d6   :  { %319 = vmax.xlane.f32.xlu1 %v318_v52 }
 0x263   :  { %v320_v55 = vpop.xlane.xlu1 %319 }
 0x264   :  { %v325_v56 = vrot.slane %v320_v55, %v275_v29  ;;  %v329_v57 = vrot.slane %v320_v55, %v328_v54 }
 0x266   :  { %v332_v58 = vsub.f32 %v298_v46, %v325_v56  ;;  %v333_v59 = vsub.f32 %v301_v48, %v329_v57 }
 0x268   :  { %v334_v60 = vmul.f32 1.442695, %v332_v58  ;;  %v336_v61 = vmul.f32 1.442695, %v333_v59 }
 0x26a   :  { %480 = vpow2.f32 %v334_v60 }
 0x26b   :  { %482 = vpow2.f32 %v336_v61 }
 0x274   :  { %v481_v62 = vpop.eup %480 }
 0x275   :  { %v483_v63 = vpop.eup %482  ;;  %341 = vperm.xlu1 %474, %v481_v62  }
 0x276   :  { %344 = vperm.xlu0 %475, %v483_v63  }
 0x2f4   :  { %v342_v0 = vpop.permute.xlu1 %341 }
 0x2f5   :  { %v345_v1 = vpop.permute.xlu0 %344  ;;  %v349_v2 = vrot.slane %v342_v0, %v308_v47 }
 0x2f6   :  { %v353_v3 = vrot.slane %v345_v1, %v308_v47 }
 0x2f8   :  { %v354_v4 = vsel %vm314_vm2, %v353_v3, %v349_v2 }
 0x2f9   :  { %v356_v5 = vsel %vm317_vm3, %v354_v4, 0.0 }
 0x2fa   :  { %357 = vadd.xlane.f32.xlu1 %v356_v5 }
 0x387   :  { %v358_v6 = vpop.xlane.xlu1 %357 }
 0x388   :  { %484 = vrcp.f32 %v358_v6 }
 0x392   :  { %v485_v7 = vpop.eup %484 }
 0x393   :  { %v365_v8 = vrot.slane %v485_v7, %v275_v29  ;;  %v369_v10 = vrot.slane %v485_v7, %v328_v54 }
 0x395   :  { %v372_v9 = vmul.f32 %v481_v62, %v365_v8  ;;  %v373_v11 = vmul.f32 %v483_v63, %v369_v10 }
 0x397   :  { %377 = vperm.xlu0 %475, %v372_v9  }
 0x39b   :  { %380 = vperm.xlu0 %475, %v373_v11  }
 0x416   :  { %v378_v12 = vpop.permute.xlu0 %377 }
 0x417   :  { %v385_v14 = vrot.slane %v378_v12, %v308_v47 }
 0x41a   :  { %v381_v13 = vpop.permute.xlu0 %380 }
 0x41b   :  { %v389_v15 = vrot.slane %v381_v13, %v308_v47 }
 0x41d   :  { %v390_v16 = vsel %vm314_vm2, %v389_v15, %v385_v14 }
 0x41e   :  { %392 = vst.msk [vmem:[#allocation10] sm:$0x3] %vm317_vm3, %v390_v16 }
 0x41f   :  { %585 = shalt.err (!%p582_p8)
}
 0x420   :  { %s586_s25 = scalar_lea.hbm %s749_s6, 32 }
 0x421   :  { %p587_p9 = scmp.ne.s32.totalorder %s749_s6, %s586_s25  ;;  %p590_p10 = scmp.lt.u32.totalorder %s586_s25, %s749_s6 }
 0x423   :  { %p592_p11 = pnand %p590_p10, %p587_p9 }
 0x425   :  { %595 = shalt.err (!%p592_p11)
}
 0x426   :  { %402 = dma.vmem_to_hbm [thread:$0]  %s400_s1, 32, %s749_s6, [#allocation4]  }
 0x427   :  { %602 = dma.done.wait [#allocation4], 32  }
 0x428   :  { %603 = vsyncadd [#allocation4], 4294967264 }
 0x429   :  { %406 = vsyncpa [#allocation3], 1 }
 0x42a   :  { %407 = vsyncpa [#allocation6], 1 }
 0x42b   :  { %408 = vsyncpa [#allocation9], 1 }
 0x42c   :  { %409 = vsyncpa [#allocation4], 1 }

</bundles_post_ra>
